<compile_context>
chip_gen: v5e
topology: v5e:2x2
jax: 0.10.0
libtpu: 0.0.40
codegen_flags: <defaults>
</compile_context>

<pallas_src>
import jax
import jax.numpy as jnp
from jax import lax
from jax.experimental import pallas as pl
from jax.experimental.pallas import tpu as pltpu

LANES = 128
INNER_MAX = 128          # groups per in-kernel compute chunk (~0.5 MiB f32 temps)


def _cdiv(a, b):
    return -(-a // b)


def _tpu_config():
    """Return (tg_max_groups, num_chunks, vmem_limit_bytes|None) per TPU gen.

    One group is always 4 KiB, so tg_max directly sets the per-input block
    size in bytes: 512 -> 2 MiB, 1024 -> 4 MiB, 2048 -> 8 MiB.
    """
    kind = ""
    try:
        dev = jax.devices()[0]
        if dev.platform == "tpu":
            kind = dev.device_kind.lower()
    except Exception:
        pass
    if ("v7" in kind) or ("tpu7" in kind) or ("7x" in kind):
        # v7x: 2 TCs, 64 MiB VMEM, ~3.2 TB/s HBM -> 8 MiB blocks (~6% step tax).
        return 2048, 2, 48 << 20
    if "v6" in kind:
        # v6e: 1 TC, 32 MiB default scoped VMEM -> 4 MiB blocks fit for free.
        return 1024, 1, None
    if "v5p" in kind:
        # v5p: megacore (2 TCs), 128 MiB VMEM.
        return 1024, 2, 40 << 20
    if "v5" in kind:
        # v5e: 1 TC, 16 MiB default scoped VMEM, ~0.8 TB/s HBM -> 2 MiB blocks.
        return 512, 1, None
    if "v4" in kind:
        return 512, 2, None
    # Conservative default (unknown / older / interpret).
    return 512, 1, None


def dice_loss(prediction, target, *, epsilon=1e-5):
    """1 - (2*sum(p*t)+eps) / (sum(p)+sum(t)+eps), matching PyTorch DiceLoss."""
    p = jnp.ravel(prediction)
    t = jnp.ravel(target)
    n = p.shape[0]
    if n == 0:
        # Empty input: all three sums are 0 -> dice = eps/eps = 1 -> loss = 0.
        return jnp.asarray(0.0, jnp.float32)

    if p.dtype != t.dtype:
        ct = jnp.promote_types(p.dtype, t.dtype)
        p = p.astype(ct)
        t = t.astype(ct)

    # Dtype-native group shape: (8,128) f32, (16,128) bf16, (32,128) int8/fp8.
    itemsize = jnp.dtype(p.dtype).itemsize
    packing = max(1, 4 // itemsize)
    sublanes = 8 * packing
    group = sublanes * LANES

    # Pad only when the flat size is not a multiple of one group (typical
    # segmentation shapes need no pad -> no extra HBM copy on the hot path).
    rem = n % group
    if rem:
        pad = group - rem
        p = jnp.pad(p, (0, pad))
        t = jnp.pad(t, (0, pad))
    num_groups = p.shape[0] // group
    p3 = p.reshape(num_groups, sublanes, LANES)   # free view of flat buffer
    t3 = t.reshape(num_groups, sublanes, LANES)

    # --- static tiling decisions (shapes are static) -------------------------
    tg_max, num_chunks, vmem_limit = _tpu_config()
    tg = min(tg_max, num_groups)
    if tg >= INNER_MAX:
        inner_g = INNER_MAX
        tg = (tg // inner_g) * inner_g            # ensure inner_g | tg
    else:
        inner_g = tg
    n_inner = tg // inner_g

    total_tiles = _cdiv(num_groups, tg)
    num_chunks = max(1, min(num_chunks, total_tiles))
    tiles_per_chunk = _cdiv(total_tiles, num_chunks)
    num_chunks = _cdiv(total_tiles, tiles_per_chunk)        # drop empty chunks
    overshoot = num_chunks * tiles_per_chunk > total_tiles  # at most 1 step
    needs_mask = overshoot or (num_groups % tg != 0)

    def kernel(p_ref, t_ref, inter_ref, sum_ref):
        c = pl.program_id(0)
        k = pl.program_id(1)

        @pl.when(k == 0)
        def _():
            inter_ref[0] = jnp.zeros((sublanes, LANES), jnp.float32)
            sum_ref[0] = jnp.zeros((sublanes, LANES), jnp.float32)

        def accum_chunk(off):
            pv = p_ref[pl.ds(off, inner_g)].astype(jnp.float32)
            tv = t_ref[pl.ds(off, inner_g)].astype(jnp.float32)
            # Reduce only over the group axis: pure vector adds into the
            # VMEM-resident (sublanes, 128) output block; the single
            # cross-lane reduction happens once, in JAX.
            inter_ref[0] += (pv * tv).sum(axis=0)
            sum_ref[0] += (pv + tv).sum(axis=0)

        if needs_mask:
            # Valid groups in this tile: 0 for the (at most one) overshoot
            # step, < tg for the single ragged tile, == tg everywhere else.
            tile_idx = c * tiles_per_chunk + k
            valid = jnp.clip(num_groups - tile_idx * tg, 0, tg)
            full_inner = valid // inner_g
            tail = valid - full_inner * inner_g
        else:
            full_inner = n_inner                  # static trip count
            tail = None

        def body(i, carry):
            accum_chunk(pl.multiple_of(i * inner_g, inner_g))
            return carry

        lax.fori_loop(0, full_inner, body, 0)     # unmasked steady state

        if needs_mask:
            # Masked tail: at most one inner chunk of the single ragged tile;
            # skipped entirely on every full tile and on overshoot steps.
            @pl.when(tail > 0)
            def _():
                off = pl.multiple_of(full_inner * inner_g, inner_g)
                pv = p_ref[pl.ds(off, inner_g)].astype(jnp.float32)
                tv = t_ref[pl.ds(off, inner_g)].astype(jnp.float32)
                row = lax.broadcasted_iota(jnp.int32, (inner_g, LANES), 0)
                m = (row < tail)[:, None, :]                   # (inner,1,128)
                inter_ref[0] += jnp.where(m, pv * tv, 0.0).sum(axis=0)
                sum_ref[0] += jnp.where(m, pv + tv, 0.0).sum(axis=0)

    if overshoot:
        def in_map(c, k):
            # The single overshoot step re-reads the last real block; its
            # contribution is fully masked out in the kernel.
            return (jnp.minimum(c * tiles_per_chunk + k, total_tiles - 1), 0, 0)
    else:
        def in_map(c, k):
            return (c * tiles_per_chunk + k, 0, 0)

    in_spec = pl.BlockSpec((tg, sublanes, LANES), in_map)
    out_spec = pl.BlockSpec((1, sublanes, LANES), lambda c, k: (c, 0, 0))

    cp_kwargs = dict(dimension_semantics=("parallel", "arbitrary"))
    if vmem_limit is not None:
        cp_kwargs["vmem_limit_bytes"] = int(vmem_limit)

    inter_part, sum_part = pl.pallas_call(
        kernel,
        out_shape=(
            jax.ShapeDtypeStruct((num_chunks, sublanes, LANES), jnp.float32),
            jax.ShapeDtypeStruct((num_chunks, sublanes, LANES), jnp.float32),
        ),
        grid_spec=pltpu.PrefetchScalarGridSpec(
            num_scalar_prefetch=0,
            grid=(num_chunks, tiles_per_chunk),
            in_specs=[in_spec, in_spec],
            out_specs=[out_spec, out_spec],
        ),
        compiler_params=pltpu.CompilerParams(**cp_kwargs),
    )(p3, t3)

    # Tiny finalize in plain JAX (configurable epsilon, no in-kernel scalars).
    intersection = jnp.sum(inter_part)
    total = jnp.sum(sum_part)
    dice_coeff = (2.0 * intersection + epsilon) / (total + epsilon)
    return 1.0 - dice_coeff


if __name__ == "__main__":
    key = jax.random.PRNGKey(0)
    kp, kt = jax.random.split(key)
    # Small segmentation-like shapes: B=2, C=4, H=W=16 (NCHW, same as PyTorch).
    prediction = jax.nn.sigmoid(
        jax.random.normal(kp, (2, 4, 16, 16), dtype=jnp.float32))
    target = (jax.random.uniform(kt, (2, 4, 16, 16)) > 0.5).astype(jnp.float32)

    loss = dice_loss(prediction, target)
    jax.block_until_ready(loss)

    # Pure-JAX reference check.
    pf = prediction.reshape(-1)
    tf = target.reshape(-1)
    inter = jnp.sum(pf * tf)
    ref = 1.0 - (2.0 * inter + 1e-5) / (jnp.sum(pf) + jnp.sum(tf) + 1e-5)
    assert jnp.allclose(loss, ref, rtol=1e-5, atol=1e-6), (loss, ref)

    print("KERNEL_OK")
</pallas_src>

<mosaic_0001>
module attributes {stable_mosaic.version = 11 : i64} {
  func.func @kernel(%arg0: i32, %arg1: i32, %arg2: memref<2x8x128xf32, #tpu.memory_space<vmem>>, %arg3: memref<2x8x128xf32, #tpu.memory_space<vmem>>, %arg4: memref<1x8x128xf32, #tpu.memory_space<vmem>>, %arg5: memref<1x8x128xf32, #tpu.memory_space<vmem>>) attributes {dimension_semantics = [#tpu.dimension_semantics<parallel>, #tpu.dimension_semantics<arbitrary>], iteration_bounds = array<i64: 1, 1>, scalar_prefetch = 0 : i64, scratch_operands = 0 : i64, tpu.core_type = #tpu.core_type<tc>, window_params = [{transform_indices = @transform_0, window_bounds = array<i64: 2, 8, 128>}, {transform_indices = @transform_1, window_bounds = array<i64: 2, 8, 128>}, {transform_indices = @transform_2, window_bounds = array<i64: 1, 8, 128>}, {transform_indices = @transform_3, window_bounds = array<i64: 1, 8, 128>}]} {
    %c0_i32 = arith.constant 0 : i32
    %0 = arith.cmpi eq, %arg1, %c0_i32 : i32
    %1 = arith.extui %0 : i1 to i32
    %c0_i32_0 = arith.constant 0 : i32
    %2 = arith.cmpi ne, %1, %c0_i32_0 : i32
    scf.if %2 {
      %cst_18 = arith.constant 0.000000e+00 : f32
      %25 = vector.broadcast %cst_18 : f32 to vector<8x128xf32>
      %c0_19 = arith.constant 0 : index
      %c0_20 = arith.constant 0 : index
      %c0_21 = arith.constant 0 : index
      %26 = vector.load %arg4[%c0_19, %c0_20, %c0_21] : memref<1x8x128xf32, #tpu.memory_space<vmem>>, vector<1x8x128xf32>
      %27 = vector.shape_cast %26 : vector<1x8x128xf32> to vector<8x128xf32>
      %28 = vector.shape_cast %25 : vector<8x128xf32> to vector<1x8x128xf32>
      tpu.vector_store %arg4[%c0_19, %c0_20, %c0_21], %28 {strides = array<i32>} : memref<1x8x128xf32, #tpu.memory_space<vmem>>, vector<1x8x128xf32>,
      %cst_22 = arith.constant 0.000000e+00 : f32
      %29 = vector.broadcast %cst_22 : f32 to vector<8x128xf32>
      %c0_23 = arith.constant 0 : index
      %c0_24 = arith.constant 0 : index
      %c0_25 = arith.constant 0 : index
      %30 = vector.load %arg5[%c0_23, %c0_24, %c0_25] : memref<1x8x128xf32, #tpu.memory_space<vmem>>, vector<1x8x128xf32>
      %31 = vector.shape_cast %30 : vector<1x8x128xf32> to vector<8x128xf32>
      %32 = vector.shape_cast %29 : vector<8x128xf32> to vector<1x8x128xf32>
      tpu.vector_store %arg5[%c0_23, %c0_24, %c0_25], %32 {strides = array<i32>} : memref<1x8x128xf32, #tpu.memory_space<vmem>>, vector<1x8x128xf32>,
    } else {
    }
    %c0_i32_1 = arith.constant 0 : i32
    %c2_i32 = arith.constant 2 : i32
    %3 = arith.muli %c0_i32_1, %c2_i32 : i32
    %4 = tpu.assume_multiple %3, 2 : i32
    %5 = arith.index_cast %4 : i32 to index
    %c0 = arith.constant 0 : index
    %c0_2 = arith.constant 0 : index
    %6 = vector.load %arg2[%5, %c0, %c0_2] : memref<2x8x128xf32, #tpu.memory_space<vmem>>, vector<2x8x128xf32>
    %7 = arith.index_cast %4 : i32 to index
    %c0_3 = arith.constant 0 : index
    %c0_4 = arith.constant 0 : index
    %8 = vector.load %arg3[%7, %c0_3, %c0_4] : memref<2x8x128xf32, #tpu.memory_space<vmem>>, vector<2x8x128xf32>
    %c0_5 = arith.constant 0 : index
    %c0_6 = arith.constant 0 : index
    %c0_7 = arith.constant 0 : index
    %9 = vector.load %arg4[%c0_5, %c0_6, %c0_7] : memref<1x8x128xf32, #tpu.memory_space<vmem>>, vector<1x8x128xf32>
    %10 = vector.shape_cast %9 : vector<1x8x128xf32> to vector<8x128xf32>
    %11 = arith.mulf %6, %8 : vector<2x8x128xf32>
    %cst = arith.constant dense<0.000000e+00> : vector<8x128xf32>
    %12 = vector.multi_reduction <add>, %11, %cst [0] : vector<2x8x128xf32> to vector<8x128xf32>
    %13 = arith.addf %10, %12 : vector<8x128xf32>
    %c0_8 = arith.constant 0 : index
    %c0_9 = arith.constant 0 : index
    %c0_10 = arith.constant 0 : index
    %14 = vector.load %arg4[%c0_8, %c0_9, %c0_10] : memref<1x8x128xf32, #tpu.memory_space<vmem>>, vector<1x8x128xf32>
    %15 = vector.shape_cast %14 : vector<1x8x128xf32> to vector<8x128xf32>
    %16 = vector.shape_cast %13 : vector<8x128xf32> to vector<1x8x128xf32>
    tpu.vector_store %arg4[%c0_8, %c0_9, %c0_10], %16 {strides = array<i32>} : memref<1x8x128xf32, #tpu.memory_space<vmem>>, vector<1x8x128xf32>,
    %c0_11 = arith.constant 0 : index
    %c0_12 = arith.constant 0 : index
    %c0_13 = arith.constant 0 : index
    %17 = vector.load %arg5[%c0_11, %c0_12, %c0_13] : memref<1x8x128xf32, #tpu.memory_space<vmem>>, vector<1x8x128xf32>
    %18 = vector.shape_cast %17 : vector<1x8x128xf32> to vector<8x128xf32>
    %19 = arith.addf %6, %8 : vector<2x8x128xf32>
    %cst_14 = arith.constant dense<0.000000e+00> : vector<8x128xf32>
    %20 = vector.multi_reduction <add>, %19, %cst_14 [0] : vector<2x8x128xf32> to vector<8x128xf32>
    %21 = arith.addf %18, %20 : vector<8x128xf32>
    %c0_15 = arith.constant 0 : index
    %c0_16 = arith.constant 0 : index
    %c0_17 = arith.constant 0 : index
    %22 = vector.load %arg5[%c0_15, %c0_16, %c0_17] : memref<1x8x128xf32, #tpu.memory_space<vmem>>, vector<1x8x128xf32>
    %23 = vector.shape_cast %22 : vector<1x8x128xf32> to vector<8x128xf32>
    %24 = vector.shape_cast %21 : vector<8x128xf32> to vector<1x8x128xf32>
    tpu.vector_store %arg5[%c0_15, %c0_16, %c0_17], %24 {strides = array<i32>} : memref<1x8x128xf32, #tpu.memory_space<vmem>>, vector<1x8x128xf32>,
    %c1_i32 = arith.constant 1 : i32
    return
  }
  func.func @transform_0(%arg0: i32, %arg1: i32) -> (i32, i32, i32) {
    %c1_i32 = arith.constant 1 : i32
    %0 = arith.muli %arg0, %c1_i32 : i32
    %1 = arith.addi %0, %arg1 : i32
    %c0_i32 = arith.constant 0 : i32
    %c0_i32_0 = arith.constant 0 : i32
    %c0_i32_1 = arith.constant 0 : i32
    return %1, %c0_i32, %c0_i32_0 : i32, i32, i32
  }
  func.func @transform_1(%arg0: i32, %arg1: i32) -> (i32, i32, i32) {
    %c1_i32 = arith.constant 1 : i32
    %0 = arith.muli %arg0, %c1_i32 : i32
    %1 = arith.addi %0, %arg1 : i32
    %c0_i32 = arith.constant 0 : i32
    %c0_i32_0 = arith.constant 0 : i32
    %c0_i32_1 = arith.constant 0 : i32
    return %1, %c0_i32, %c0_i32_0 : i32, i32, i32
  }
  func.func @transform_2(%arg0: i32, %arg1: i32) -> (i32, i32, i32) {
    %c0_i32 = arith.constant 0 : i32
    %c0_i32_0 = arith.constant 0 : i32
    %c0_i32_1 = arith.constant 0 : i32
    return %arg0, %c0_i32, %c0_i32_0 : i32, i32, i32
  }
  func.func @transform_3(%arg0: i32, %arg1: i32) -> (i32, i32, i32) {
    %c0_i32 = arith.constant 0 : i32
    %c0_i32_0 = arith.constant 0 : i32
    %c0_i32_1 = arith.constant 0 : i32
    return %arg0, %c0_i32, %c0_i32_0 : i32, i32, i32
  }
}

</mosaic_0001>

<bundles_post_ra>
// kernel: tpu_custom_call.1
= control target key start
LH: loop header
LB: loop body
LE: loop exit
PB: predicated region body
PF: predicated region fallthrough
CT: control target
= control target key end

     0   :  { %9 = vsyncpa [#allocation3], 0  ;;  %s267_s0 = inlined_call_operand.hbm [shape: f32[2,8,128], index: 0, kind: input, shape index: {}]   ;;  %s268_s1 = inlined_call_operand.hbm [shape: f32[2,8,128], index: 1, kind: input, shape index: {}]   ;;  %s269_s2 = inlined_call_operand.hbm [shape: f32[1,8,128], index: 2, kind: output, shape index: {0}]   ;;  %s270_s3 = inlined_call_operand.hbm [shape: f32[1,8,128], index: 3, kind: output, shape index: {1}]  }
   0x1   :  { %10 = vsyncpa [#allocation6], 0 }
   0x2   :  { %11 = vsyncpa [#allocation4], 0 }
   0x3   :  { %12 = vsyncpa [#allocation9], 0  ;;  %s21_s14 = sshll.u32 %s267_s0, 4  ;;  %s229_s15 = smov [#allocation2]   ;;  %s22_s14 = int_to_ptr.hbm [resolvable:$true] %s21_s14 }
   0x4   :  { %s23_s16 = sshll.u32 %s229_s15, 4  ;;  %s38_s19 = sshll.u32 %s268_s1, 4  ;;  %s24_s16 = int_to_ptr.vmem [resolvable:$true] %s23_s16  ;;  %s39_s19 = int_to_ptr.hbm [resolvable:$true] %s38_s19 }
   0x5   :  { %s230_s20 = smov 128   ;;  %s231_s21 = smov 8  }
   0x6   :  { %29 = dma.hbm_to_vmem [thread:$0]  %s22_s14, 256, %s24_s16, [#allocation3], %s230_s20, %s230_s20, %s231_s21  }
   0x7   :  { %s232_s22 = smov [#allocation5]  }
   0x8   :  { %s40_s23 = sshll.u32 %s232_s22, 4  ;;  %s41_s23 = int_to_ptr.vmem [resolvable:$true] %s40_s23 }
   0x9   :  { %46 = dma.hbm_to_vmem [thread:$0]  %s39_s19, 256, %s41_s23, [#allocation6], %s230_s20, %s230_s20, %s231_s21  }
   0xa   :  { %221 = dma.done.wait [#allocation3], 256  }
   0xb   :  { %222 = vsyncadd [#allocation3], 4294967040 }
   0xc   :  { %223 = dma.done.wait [#allocation6], 256  }
   0xd   :  { %224 = vsyncadd [#allocation6], 4294967040  ;;  %v67_v0 = vld [vmem:[#allocation2] sm:$0xff]  ;;  %v68_v1 = vld [vmem:[#allocation2 + $0x8] sm:$0xff]  ;;  %s233_s0 = smov [#allocation7]   ;;  %s91_s26 = sshll.u32 %s269_s2, 4  ;;  %s92_s26 = int_to_ptr.hbm [resolvable:$true] %s91_s26 }
   0xe   :  { %v70_v2 = vld [vmem:[#allocation5] sm:$0xff]  ;;  %v71_v3 = vld [vmem:[#allocation5 + $0x8] sm:$0xff]  ;;  %s89_s1 = sshll.u32 %s233_s0, 4  ;;  %s234_s27 = smov [#allocation8]   ;;  %s90_s1 = int_to_ptr.vmem [resolvable:$true] %s89_s1 }
   0xf   :  { %v73_v4 = vmul.f32 %v70_v2, %v67_v0  ;;  %v79_v5 = vadd.f32 %v70_v2, %v67_v0  ;;  %v74_v6 = vmul.f32 %v71_v3, %v68_v1  ;;  %v80_v7 = vadd.f32 %v71_v3, %v68_v1  ;;  %s100_s28 = sshll.u32 %s234_s27, 4  ;;  %s102_s4 = sshll.u32 %s270_s3, 4  ;;  %s101_s28 = int_to_ptr.vmem [resolvable:$true] %s100_s28  ;;  %s103_s4 = int_to_ptr.hbm [resolvable:$true] %s102_s4 }
  0x11   :  { %v75_v8 = vadd.f32 %v74_v6, %v73_v4  ;;  %v81_v9 = vadd.f32 %v80_v7, %v79_v5 }
  0x13   :  { %77 = vst [vmem:[#allocation7] sm:$0xff] %v75_v8 }
  0x14   :  { %83 = vst [vmem:[#allocation8] sm:$0xff] %v81_v9  ;;  %94 = dma.vmem_to_hbm [thread:$0]  %s90_s1, 128, %s92_s26, [#allocation4]  }
  0x15   :  { %105 = dma.vmem_to_hbm [thread:$0]  %s101_s28, 128, %s103_s4, [#allocation9]  }
  0x16   :  { %225 = dma.done.wait [#allocation4], 128  }
  0x17   :  { %226 = vsyncadd [#allocation4], 4294967168 }
  0x18   :  { %227 = dma.done.wait [#allocation9], 128  }
  0x19   :  { %228 = vsyncadd [#allocation9], 4294967168 }
  0x1a   :  { %114 = vsyncpa [#allocation3], 1 }
  0x1b   :  { %115 = vsyncpa [#allocation6], 1 }
  0x1c   :  { %116 = vsyncpa [#allocation4], 1 }
  0x1d   :  { %117 = vsyncpa [#allocation9], 1 }

</bundles_post_ra>
